<compile_context>
chip_gen: v5e
topology: v5e:2x2
jax: 0.10.0
libtpu: 0.0.40
codegen_flags: <defaults>
</compile_context>

<pallas_src>
import functools

import jax
import jax.numpy as jnp
from jax.experimental import pallas as pl
from jax.experimental.pallas import tpu as pltpu


def _conv1d_deriv_kernel(w_ref, x_ref, o_ref, *, kernel_size):
    # w_ref: (K,) f32 in SMEM -- filter taps with 1/resol folded in.
    # x_ref: (tn, L)     in VMEM
    # o_ref: (tn, L_out) in VMEM, L_out = L - K + 1
    l_out = o_ref.shape[1]
    xv = x_ref[...].astype(jnp.float32)          # single VMEM read of the tile
    acc = w_ref[0] * xv[:, 0:l_out]
    for k in range(1, kernel_size):              # K-1 shifted taps (in-register)
        acc = acc + w_ref[k] * xv[:, k:k + l_out]
    o_ref[...] = acc.astype(o_ref.dtype)


def _vmem_budget_bytes():
    try:
        info = pltpu.get_tpu_info()
        phys = int(getattr(info, "vmem_capacity_bytes", 64 << 20))
    except Exception:
        phys = 64 << 20                          # conservative: v7x per-core VMEM
    # Half of physical, capped at 48 MiB: ~48 MiB on v5e/v6e (128 MiB VMEM),
    # ~32 MiB on v7x (64 MiB VMEM) -- leaves headroom for compiler scratch.
    return min(phys // 2, 48 << 20)


def _row_vmem_bytes(l_in, l_out, itemsize):
    # Double-buffered in+out DMA tiles + f32 working values (xv, acc), per row.
    return 2 * itemsize * (l_in + l_out) + 4 * (l_in + l_out)


def _conv1d_rows(x2d, w, kernel_size, vmem_budget):
    n, l = x2d.shape
    l_out = l - kernel_size + 1
    itemsize = jnp.dtype(x2d.dtype).itemsize

    row_io = itemsize * (l + l_out)              # HBM<->VMEM bytes per row
    row_vmem = _row_vmem_bytes(l, l_out, itemsize)

    # Row tile: DMA block in the ~2-8 MiB sweet spot, within the VMEM budget,
    # and >= 4 grid steps when N allows (keeps both v7x TensorCores busy and
    # the DMA pipeline double-buffered).
    tn = min(max(vmem_budget // row_vmem, 1),
             max((4 << 20) // max(row_io, 1), 1))
    if n >= 32:
        tn = min(tn, n // 4)
    tn = max(8, (tn // 8) * 8)
    if tn >= n:
        tn = n                                   # single full-extent block
    grid_n = pl.cdiv(n, tn)

    return pl.pallas_call(
        functools.partial(_conv1d_deriv_kernel, kernel_size=kernel_size),
        out_shape=jax.ShapeDtypeStruct((n, l_out), x2d.dtype),
        grid=(grid_n,),
        in_specs=[
            pl.BlockSpec(memory_space=pltpu.SMEM),          # K filter taps
            pl.BlockSpec((tn, l), lambda i: (i, 0)),        # input rows, full L
        ],
        out_specs=pl.BlockSpec((tn, l_out), lambda i: (i, 0)),
        compiler_params=pltpu.CompilerParams(
            dimension_semantics=("parallel",),
            vmem_limit_bytes=vmem_budget),
        cost_estimate=pl.CostEstimate(
            flops=2 * kernel_size * n * l_out,
            transcendentals=0,
            bytes_accessed=itemsize * n * (l + l_out)),
    )(w, x2d)


def conv1d_derivative(x, der_filter, resol):
    """x: (N, 1, L). der_filter: (1, 1, K). Returns (N, 1, L - K + 1)."""
    n, c, l = x.shape
    assert c == 1, "Conv1dDerivative has a single input channel"
    kernel_size = int(der_filter.shape[-1])
    l_out = l - kernel_size + 1
    assert l_out >= 1

    # Fold the 1/resol scaling into the (tiny) filter.
    w = jnp.asarray(der_filter, jnp.float32).reshape(kernel_size) / jnp.float32(resol)
    x2d = x.reshape(n, l)                        # free: (N, 1, L) -> (N, L)

    itemsize = jnp.dtype(x.dtype).itemsize
    vmem_budget = _vmem_budget_bytes()

    if 8 * _row_vmem_bytes(l, l_out, itemsize) <= vmem_budget:
        out2d = _conv1d_rows(x2d, w, kernel_size, vmem_budget)
    else:
        # Pathologically long rows: chunk over L with a K-1 halo so that even
        # an 8-row block always fits the VMEM budget.
        # TODO(synk): replace with in-kernel L tiling + halo DMA
        # (memory_space=pl.ANY + pltpu.make_async_copy) to avoid the extra
        # wrapper-side chunk slices of x.
        chunk = 1 << 16                          # output columns per chunk
        outs = []
        for start in range(0, l_out, chunk):
            width = min(chunk, l_out - start)
            xs = x2d[:, start:start + width + kernel_size - 1]
            outs.append(_conv1d_rows(xs, w, kernel_size, vmem_budget))
        out2d = jnp.concatenate(outs, axis=1)

    return out2d.reshape(n, 1, l_out)


if __name__ == "__main__":
    # Central-difference time-derivative filter as used in the 2DGS script.
    DerFilter = [[[-1.0, 0.0, 1.0]]]             # shape (1, 1, 3)
    dt = 0.01
    resol = 2.0 * dt
    der_filter = jnp.asarray(DerFilter, jnp.float32)

    def reference(x, der_filter_, resol_):
        w = der_filter_.reshape(-1)
        k = w.shape[0]
        l_out = x.shape[-1] - k + 1
        ref = sum(w[i] * x[:, 0, i:i + l_out] for i in range(k)) / resol_
        return ref.reshape(x.shape[0], 1, l_out)

    key = jax.random.PRNGKey(0)

    # Small case (mirrors the PyTorch NCL usage).
    x_small = jax.random.normal(key, (2, 1, 16), dtype=jnp.float32)
    out_small = jax.block_until_ready(conv1d_derivative(x_small, der_filter, resol))
    ref_small = reference(x_small, der_filter, resol)
    assert out_small.shape == ref_small.shape, out_small.shape
    assert jnp.allclose(out_small, ref_small, atol=1e-5, rtol=1e-5), "small mismatch"

    # Larger case exercising multiple grid steps and a ragged last row block.
    key2 = jax.random.fold_in(key, 1)
    x_big = jax.random.normal(key2, (50, 1, 257), dtype=jnp.float32)
    out_big = jax.block_until_ready(conv1d_derivative(x_big, der_filter, resol))
    ref_big = reference(x_big, der_filter, resol)
    assert out_big.shape == ref_big.shape, out_big.shape
    assert jnp.allclose(out_big, ref_big, atol=1e-5, rtol=1e-5), "big mismatch"

    print("KERNEL_OK")
</pallas_src>

<mosaic_0001>
module attributes {stable_mosaic.version = 11 : i64} {
  func.func @_conv1d_deriv_kernel(%arg0: i32, %arg1: memref<3xf32, #tpu.memory_space<smem>>, %arg2: memref<2x16xf32, #tpu.memory_space<vmem>>, %arg3: memref<2x14xf32, #tpu.memory_space<vmem>>) attributes {dimension_semantics = [#tpu.dimension_semantics<parallel>], iteration_bounds = array<i64: 1>, scalar_prefetch = 0 : i64, scratch_operands = 0 : i64, tpu.core_type = #tpu.core_type<tc>, window_params = [{transform_indices = @transform_0, window_bounds = array<i64: 3>}, {transform_indices = @transform_1, window_bounds = array<i64: 2, 16>}, {transform_indices = @transform_2, window_bounds = array<i64: 2, 14>}]} {
    %c0 = arith.constant 0 : index
    %c0_0 = arith.constant 0 : index
    %0 = vector.load %arg2[%c0, %c0_0] : memref<2x16xf32, #tpu.memory_space<vmem>>, vector<2x16xf32>
    %c0_1 = arith.constant 0 : index
    %1 = memref.load %arg1[%c0_1] : memref<3xf32, #tpu.memory_space<smem>>
    %2 = vector.extract_strided_slice %0 {offsets = [0, 0], sizes = [2, 14], strides = [1, 1]} : vector<2x16xf32> to vector<2x14xf32>
    %3 = vector.broadcast %1 : f32 to vector<2x14xf32>
    %4 = arith.mulf %3, %2 : vector<2x14xf32>
    %c1 = arith.constant 1 : index
    %5 = memref.load %arg1[%c1] : memref<3xf32, #tpu.memory_space<smem>>
    %6 = vector.extract_strided_slice %0 {offsets = [0, 1], sizes = [2, 14], strides = [1, 1]} : vector<2x16xf32> to vector<2x14xf32>
    %7 = vector.broadcast %5 : f32 to vector<2x14xf32>
    %8 = arith.mulf %7, %6 : vector<2x14xf32>
    %9 = arith.addf %4, %8 : vector<2x14xf32>
    %c2 = arith.constant 2 : index
    %10 = memref.load %arg1[%c2] : memref<3xf32, #tpu.memory_space<smem>>
    %11 = vector.extract_strided_slice %0 {offsets = [0, 2], sizes = [2, 14], strides = [1, 1]} : vector<2x16xf32> to vector<2x14xf32>
    %12 = vector.broadcast %10 : f32 to vector<2x14xf32>
    %13 = arith.mulf %12, %11 : vector<2x14xf32>
    %14 = arith.addf %9, %13 : vector<2x14xf32>
    %c0_2 = arith.constant 0 : index
    %c0_3 = arith.constant 0 : index
    %15 = vector.load %arg3[%c0_2, %c0_3] : memref<2x14xf32, #tpu.memory_space<vmem>>, vector<2x14xf32>
    tpu.vector_store %arg3[%c0_2, %c0_3], %14 {strides = array<i32>} : memref<2x14xf32, #tpu.memory_space<vmem>>, vector<2x14xf32>,
    return
  }
  func.func @transform_0(%arg0: i32) -> i32 {
    %c0_i32 = arith.constant 0 : i32
    %c0_i32_0 = arith.constant 0 : i32
    return %c0_i32 : i32
  }
  func.func @transform_1(%arg0: i32) -> (i32, i32) {
    %c0_i32 = arith.constant 0 : i32
    %c0_i32_0 = arith.constant 0 : i32
    return %arg0, %c0_i32 : i32, i32
  }
  func.func @transform_2(%arg0: i32) -> (i32, i32) {
    %c0_i32 = arith.constant 0 : i32
    %c0_i32_0 = arith.constant 0 : i32
    return %arg0, %c0_i32 : i32, i32
  }
}

</mosaic_0001>

<bundles_post_ra>
// kernel: tpu_custom_call.1
= control target key start
LH: loop header
LB: loop body
LE: loop exit
PB: predicated region body
PF: predicated region fallthrough
CT: control target
= control target key end

     0   :  { %7 = vsyncpa [#allocation5], 0  ;;  %s181_s0 = inlined_call_operand.hbm [shape: f32[3], index: 0, kind: input, shape index: {}]   ;;  %s182_s1 = inlined_call_operand.hbm [shape: f32[2,16], index: 1, kind: input, shape index: {}]   ;;  %s183_s2 = inlined_call_operand.hbm [shape: f32[2,14], index: 2, kind: output, shape index: {}]  }
   0x1   :  { %8 = vsyncpa [#allocation3], 0 }
   0x2   :  { %9 = vsyncpa [#allocation4], 0  ;;  %s15_s11 = sshll.u32 %s181_s0, 4  ;;  %s24_s14 = sshll.u32 %s182_s1, 4  ;;  %s16_s11 = int_to_ptr.hbm [resolvable:$true] %s15_s11  ;;  %s25_s14 = int_to_ptr.hbm [resolvable:$true] %s24_s14 }
   0x3   :  { %s152_s15 = smov [#allocation2]   ;;  %s153_s16 = smov [#allocation6]  }
   0x4   :  { %18 = dma.hbm_to_smem %s16_s11, 16, %s152_s15, [#allocation5]  }
   0x5   :  { %s26_s17 = sshll.u32 %s153_s16, 4  ;;  %s27_s17 = int_to_ptr.vmem [resolvable:$true] %s26_s17 }
   0x6   :  { %29 = dma.hbm_to_vmem [thread:$0]  %s25_s14, 32, %s27_s17, [#allocation3]  }
   0x7   :  { %146 = dma.done.wait [#allocation5], 16  }
   0x8   :  { %147 = vsyncadd [#allocation5], 4294967280 }
   0x9   :  { %148 = dma.done.wait [#allocation3], 32  }
   0xa   :  { %149 = vsyncadd [#allocation3], 4294967264 }
   0xb   :  { %38 = sfence }
   0xc   :  { %s79_s18 = sld [smem:[#allocation2 + $0x1]]  ;;  %v39_v0 = vld [vmem:[#allocation6] sm:$0x3]  ;;  %s154_s0 = smov 127   ;;  %vm59_vm0 = vcmask 107520  }
   0xd   :  { %s80_s19 = sld [smem:[#allocation2 + $0x2]]  ;;  %s155_s1 = smov 126  }
   0xe   :  { %s40_s20 = sld [smem:[#allocation2]]  ;;  %s156_s21 = smov [#allocation7]  }
   0xf   :  { %s66_s22 = sshll.u32 %s156_s21, 4  ;;  %s68_s25 = sshll.u32 %s183_s2, 4  ;;  %s67_s22 = int_to_ptr.vmem [resolvable:$true] %s66_s22  ;;  %s69_s25 = int_to_ptr.hbm [resolvable:$true] %s68_s25 }
  0x12   :  { %v44_v1 = vstv %s79_s18 }
  0x13   :  { %v45_v2 = vmul.f32 %v44_v1, %v39_v0  ;;  %v52_v3 = vstv %s80_s19 }
  0x14   :  { %v53_v4 = vmul.f32 %v52_v3, %v39_v0  ;;  %v41_v5 = vstv %s40_s20 }
  0x15   :  { %47 = vrot.lane.b32.xlu0 %v45_v2, %s154_s0  ;;  %v42_v7 = vmul.f32 %v41_v5, %v39_v0 }
  0x1d   :  { %55 = vrot.lane.b32.xlu0 %v53_v4, %s155_s1 }
  0x87   :  { %v48_v6 = vpop.permute.xlu0 %47 }
  0x88   :  { %v50_v8 = vadd.f32 %v48_v6, %v42_v7 }
  0x8f   :  { %v56_v9 = vpop.permute.xlu0 %55 }
  0x90   :  { %v58_v10 = vadd.f32 %v56_v9, %v50_v8 }
  0x92   :  { %60 = vst.msk [vmem:[#allocation7] sm:$0x3] %vm59_vm0, %v58_v10 }
  0x93   :  { %71 = dma.vmem_to_hbm [thread:$0]  %s67_s22, 32, %s69_s25, [#allocation4]  }
  0x94   :  { %150 = dma.done.wait [#allocation4], 32  }
  0x95   :  { %151 = vsyncadd [#allocation4], 4294967264 }
  0x96   :  { %76 = vsyncpa [#allocation3], 1 }
  0x97   :  { %77 = vsyncpa [#allocation4], 1 }
  0x98   :  { %78 = vsyncpa [#allocation5], 1 }

</bundles_post_ra>
